<compile_context>
chip_gen: v7x
topology: tpu7x:2x2x1
jax: 0.10.0
libtpu: 0.0.40
codegen_flags: <defaults>
</compile_context>

<pallas_src>
import jax
import jax.numpy as jnp
from jax.experimental import pallas as pl
from jax.experimental.pallas import tpu as pltpu


def _cdiv(a, b):
    return -(-a // b)


def _round_up(x, m):
    return _cdiv(x, m) * m


def _flatten_head_kernel(x_ref, w_ref, b_ref, o_ref, acc_ref=None):
    # x_ref:   (TM, TK)         native-dtype x tile (streamed, pipelined)
    # w_ref:   (nf_pad, T_pad)  bf16, pre-transposed weight, resident (constant index)
    # b_ref:   (1, T_pad)       f32 bias, resident
    # o_ref:   (TM, T_pad)      output tile (resident across the K axis)
    # acc_ref: (TM, T_pad) f32 scratch, only present when o_ref is not f32
    acc = o_ref if acc_ref is None else acc_ref
    k = pl.program_id(1)
    tk = x_ref.shape[1]

    @pl.when(k == 0)
    def _():
        # Fold the bias into the accumulator init (removes the epilogue add).
        acc[...] = jnp.broadcast_to(b_ref[...], acc.shape).astype(acc.dtype)

    # K-slab of the resident weight; start is TK-aligned (TK is a multiple of 128).
    start = pl.multiple_of(k * tk, tk)
    acc[...] += jnp.dot(
        x_ref[...].astype(jnp.bfloat16),      # VPU cast, hidden under the DMA
        w_ref[pl.ds(start, tk), :],           # (TK, T_pad) bf16 slab, no transpose
        preferred_element_type=jnp.float32,   # f32 MXU accumulation
    )

    if acc_ref is not None:
        @pl.when(k == pl.num_programs(1) - 1)
        def _():
            o_ref[...] = acc_ref[...].astype(o_ref.dtype)
    # TODO(synk): head_dropout > 0 at train time would need pltpu.prng_* masking;
    # PatchTST's FlattenHead defaults to p=0 (identity), so it is omitted.


def flatten_head_forward(x, weight, bias, *, max_tm=1024, max_tk=512):
    """x: [B, n_vars, d_model, patch_num]; weight: [target_window, nf]; bias: [target_window]."""
    B, n_vars, d_model, patch_num = x.shape
    nf = d_model * patch_num
    target_window, nf_w = weight.shape
    assert nf_w == nf
    out_dtype = x.dtype

    M = B * n_vars

    # ---- balanced tile sizes (lane = 128, sublane = 8); padding bounded by one tile ----
    T_pad = _round_up(target_window, 128)                  # lane-dense output / N dim

    # At least 2 M tiles when M allows (keeps both v7x TensorCores busy), balanced
    # so that M_pad never blows up for awkward sizes.
    n_m = max(_cdiv(M, max_tm), 2 if M > 8 else 1)
    TM = _round_up(_cdiv(M, n_m), 8)
    M_pad = n_m * TM

    n_k = max(_cdiv(nf, max_tk), 1)
    TK = _round_up(_cdiv(nf, n_k), 128)
    nf_pad = n_k * TK

    # ---- host-side glue ----
    # Flatten (row-major == torch.flatten(start_dim=-2) + batch collapse); keep the
    # activation in its native dtype (no extra HBM pass); pad only if needed.
    x_flat = x.reshape(M, nf)
    if (M_pad, nf_pad) != (M, nf):
        x_flat = jnp.pad(x_flat, ((0, M_pad - M), (0, nf_pad - nf)))

    # Pre-transpose the weight once (parameter; amortized across calls) so the kernel
    # does a standard K-major dot, then pad and cast to bf16 for the MXU.
    w_t = weight.T                                           # (nf, target_window)
    if (nf_pad, T_pad) != (nf, target_window):
        w_t = jnp.pad(w_t, ((0, nf_pad - nf), (0, T_pad - target_window)))
    w_t = w_t.astype(jnp.bfloat16)

    b2 = bias
    if T_pad != target_window:
        b2 = jnp.pad(b2, (0, T_pad - target_window))
    b2 = b2.reshape(1, T_pad).astype(jnp.float32)

    # f32 output -> accumulate directly in the resident output block, no scratch.
    use_scratch = out_dtype != jnp.float32
    scratch_shapes = [pltpu.VMEM((TM, T_pad), jnp.float32)] if use_scratch else []

    grid = (M_pad // TM, nf_pad // TK)

    out = pl.pallas_call(
        _flatten_head_kernel,
        out_shape=jax.ShapeDtypeStruct((M_pad, T_pad), out_dtype),
        grid_spec=pltpu.PrefetchScalarGridSpec(
            num_scalar_prefetch=0,
            grid=grid,
            in_specs=[
                # x tiles: streamed / pipelined over (i, k).
                pl.BlockSpec((TM, TK), lambda i, k: (i, k)),
                # weight: one full block, constant index -> DMA'd from HBM exactly once.
                pl.BlockSpec((nf_pad, T_pad), lambda i, k: (0, 0)),
                # bias: resident.
                pl.BlockSpec((1, T_pad), lambda i, k: (0, 0)),
            ],
            # Output block ignores k -> resident across the reduction axis.
            out_specs=pl.BlockSpec((TM, T_pad), lambda i, k: (i, 0)),
            scratch_shapes=scratch_shapes,
        ),
        compiler_params=pltpu.CompilerParams(
            # M tiles are independent -> shard across v7x's 2 TensorCores; K is a reduction.
            dimension_semantics=("parallel", "arbitrary"),
            vmem_limit_bytes=48 * 1024 * 1024,
        ),
    )(x_flat, w_t, b2)

    out = out[:M, :target_window]
    return out.reshape(B, n_vars, target_window)


if __name__ == "__main__":
    # Small shapes consistent with PatchTST's FlattenHead.
    B, n_vars, d_model, patch_num = 2, 4, 16, 8
    nf = d_model * patch_num          # 128
    target_window = 32

    key = jax.random.PRNGKey(0)
    kx, kw, kb = jax.random.split(key, 3)

    x = jax.random.normal(kx, (B, n_vars, d_model, patch_num), dtype=jnp.float32)

    # Deterministic parameter init mimicking nn.Linear default (uniform +-1/sqrt(nf)).
    bound = 1.0 / (nf ** 0.5)
    weight = jax.random.uniform(kw, (target_window, nf), jnp.float32, -bound, bound)
    bias = jax.random.uniform(kb, (target_window,), jnp.float32, -bound, bound)

    out = flatten_head_forward(x, weight, bias)
    out = jax.block_until_ready(out)
    assert out.shape == (B, n_vars, target_window)

    # References: the kernel feeds the MXU in bf16 with f32 accumulation, so check
    # tightly against a bf16 reference and loosely against the full-f32 reference.
    x_flat = x.reshape(B, n_vars, nf)
    ref_f32 = x_flat @ weight.T + bias
    ref_bf16 = (
        jnp.einsum(
            "bvk,tk->bvt",
            x_flat.astype(jnp.bfloat16),
            weight.astype(jnp.bfloat16),
            preferred_element_type=jnp.float32,
        )
        + bias
    )

    assert jnp.allclose(out, ref_bf16, atol=1e-3, rtol=1e-3), "mismatch vs bf16 reference"
    assert jnp.allclose(out, ref_f32, atol=3e-2, rtol=3e-2), "mismatch vs f32 reference"

    print("KERNEL_OK")
</pallas_src>

<mosaic_0001>
module attributes {stable_mosaic.version = 11 : i64} {
  func.func @_flatten_head_kernel(%arg0: i32, %arg1: i32, %arg2: memref<8x128xf32, #tpu.memory_space<vmem>>, %arg3: memref<128x128xbf16, #tpu.memory_space<vmem>>, %arg4: memref<1x128xf32, #tpu.memory_space<vmem>>, %arg5: memref<8x128xf32, #tpu.memory_space<vmem>>) attributes {dimension_semantics = [#tpu.dimension_semantics<parallel>, #tpu.dimension_semantics<arbitrary>], iteration_bounds = array<i64: 1, 1>, scalar_prefetch = 0 : i64, scratch_operands = 0 : i64, tpu.core_type = #tpu.core_type<tc>, window_params = [{transform_indices = @transform_0, window_bounds = array<i64: 8, 128>}, {pipeline_mode = #tpu.pipeline_mode<synchronous>, transform_indices = @transform_1, window_bounds = array<i64: 128, 128>}, {pipeline_mode = #tpu.pipeline_mode<synchronous>, transform_indices = @transform_2, window_bounds = array<i64: 1, 128>}, {transform_indices = @transform_3, window_bounds = array<i64: 8, 128>}]} {
    %c0_i32 = arith.constant 0 : i32
    %0 = arith.cmpi eq, %arg1, %c0_i32 : i32
    %1 = arith.extui %0 : i1 to i32
    %c0_i32_0 = arith.constant 0 : i32
    %2 = arith.cmpi ne, %1, %c0_i32_0 : i32
    scf.if %2 {
      %c0_7 = arith.constant 0 : index
      %c0_8 = arith.constant 0 : index
      %13 = vector.load %arg4[%c0_7, %c0_8] : memref<1x128xf32, #tpu.memory_space<vmem>>, vector<1x128xf32>
      %14 = vector.shape_cast %13 : vector<1x128xf32> to vector<1x128xf32>
      %15 = vector.broadcast %14 : vector<1x128xf32> to vector<8x128xf32>
      %c0_9 = arith.constant 0 : index
      %c0_10 = arith.constant 0 : index
      %16 = vector.load %arg5[%c0_9, %c0_10] : memref<8x128xf32, #tpu.memory_space<vmem>>, vector<8x128xf32>
      tpu.vector_store %arg5[%c0_9, %c0_10], %15 {strides = array<i32>} : memref<8x128xf32, #tpu.memory_space<vmem>>, vector<8x128xf32>,
    } else {
    }
    %c128_i32 = arith.constant 128 : i32
    %3 = arith.muli %arg1, %c128_i32 : i32
    %4 = tpu.assume_multiple %3, 128 : i32
    %c0 = arith.constant 0 : index
    %c0_1 = arith.constant 0 : index
    %5 = vector.load %arg5[%c0, %c0_1] : memref<8x128xf32, #tpu.memory_space<vmem>>, vector<8x128xf32>
    %c0_2 = arith.constant 0 : index
    %c0_3 = arith.constant 0 : index
    %6 = vector.load %arg2[%c0_2, %c0_3] : memref<8x128xf32, #tpu.memory_space<vmem>>, vector<8x128xf32>
    %7 = arith.truncf %6 : vector<8x128xf32> to vector<8x128xbf16>
    %8 = arith.index_cast %4 : i32 to index
    %c0_4 = arith.constant 0 : index
    %9 = vector.load %arg3[%8, %c0_4] : memref<128x128xbf16, #tpu.memory_space<vmem>>, vector<128x128xbf16>
    %cst = arith.constant dense<0.000000e+00> : vector<8x128xf32>
    %10 = tpu.matmul %7, %9, %cst {dimension_numbers = #tpu.dot_dimension_numbers<[1], [0], [0], [1], [0, 0, 1, 1], [], []>} : vector<8x128xbf16>, vector<128x128xbf16>, vector<8x128xf32> -> vector<8x128xf32>
    %11 = arith.addf %5, %10 : vector<8x128xf32>
    %c0_5 = arith.constant 0 : index
    %c0_6 = arith.constant 0 : index
    %12 = vector.load %arg5[%c0_5, %c0_6] : memref<8x128xf32, #tpu.memory_space<vmem>>, vector<8x128xf32>
    tpu.vector_store %arg5[%c0_5, %c0_6], %11 {strides = array<i32>} : memref<8x128xf32, #tpu.memory_space<vmem>>, vector<8x128xf32>,
    return
  }
  func.func @transform_0(%arg0: i32, %arg1: i32) -> (i32, i32) {
    %c0_i32 = arith.constant 0 : i32
    return %arg0, %arg1 : i32, i32
  }
  func.func @transform_1(%arg0: i32, %arg1: i32) -> (i32, i32) {
    %c0_i32 = arith.constant 0 : i32
    %c0_i32_0 = arith.constant 0 : i32
    %c0_i32_1 = arith.constant 0 : i32
    return %c0_i32, %c0_i32_0 : i32, i32
  }
  func.func @transform_2(%arg0: i32, %arg1: i32) -> (i32, i32) {
    %c0_i32 = arith.constant 0 : i32
    %c0_i32_0 = arith.constant 0 : i32
    %c0_i32_1 = arith.constant 0 : i32
    return %c0_i32, %c0_i32_0 : i32, i32
  }
  func.func @transform_3(%arg0: i32, %arg1: i32) -> (i32, i32) {
    %c0_i32 = arith.constant 0 : i32
    %c0_i32_0 = arith.constant 0 : i32
    return %arg0, %c0_i32 : i32, i32
  }
}

</mosaic_0001>

<bundles_post_ra>
// kernel: tpu_custom_call.1
= control target key start
LH: loop header
LB: loop body
LE: loop exit
PB: predicated region body
PF: predicated region fallthrough
CT: control target
= control target key end

     0   :  { %8 = vsyncpa [#allocation3], 0  ;;  %s384_s0 = inlined_call_operand.hbm [shape: f32[8,128], index: 0, kind: input, shape index: {}]   ;;  %s385_s1 = inlined_call_operand.hbm [shape: bf16[128,128], index: 1, kind: input, shape index: {}]   ;;  %s386_s2 = inlined_call_operand.vmem [shape: f32[1,128], index: 2, kind: input, shape index: {}]   ;;  %s387_s3 = inlined_call_operand.hbm [shape: f32[8,128], index: 3, kind: output, shape index: {}]  }
   0x1   :  { %9 = vsyncpa [#allocation6], 0 }
   0x2   :  { %10 = vsyncpa [#allocation4], 0  ;;  %s311_s12 = smov [#allocation2]   ;;  %s312_s14 = smov [#allocation5]  }
   0x3   :  { %s17_s13 = sshll.u32 %s311_s12, 4  ;;  %s26_s15 = sshll.u32 %s312_s14, 4  ;;  %s18_s13 = int_to_ptr.vmem [resolvable:$true] %s17_s13  ;;  %s338_s15 = int_to_ptr.vmem [resolvable:$true] %s26_s15 }
   0x4   :  { %s239_s18 = scalar_lea.hbm %s384_s0, 128 }
   0x5   :  { %p240_p0 = scmp.ne.s32.totalorder %s384_s0, %s239_s18  ;;  %p243_p1 = scmp.lt.u32.totalorder %s239_s18, %s384_s0 }
   0x7   :  { %p245_p2 = pnand %p243_p1, %p240_p0 }
   0x9   :  { %248 = shalt.err (!%p245_p2)
}
   0xa   :  { %s249_s23 = scalar_lea.vmem %s18_s13, 128  ;;  %p254_p4 = scmp.lt.s32.totalorder %s18_s13, %s18_s13 }
   0xb   :  { %p250_p3 = scmp.ne.s32.totalorder %s18_s13, %s249_s23  ;;  %p255_p5 = scmp.lt.s32.totalorder %s249_s23, %s249_s23 }
   0xd   :  { %p256_p6 = por %p255_p5, %p254_p4 }
   0xf   :  { %p257_p7 = pnand %p256_p6, %p250_p3 }
  0x11   :  { %260 = shalt.err (!%p257_p7)
}
  0x12   :  { %20 = dma.hbm_to_vmem [thread:$0]  %s384_s0, 128, %s18_s13, [#allocation3]  }
  0x13   :  { %s261_s28 = scalar_lea.hbm %s385_s1, 1024 }
  0x14   :  { %p262_p8 = scmp.ne.s32.totalorder %s385_s1, %s261_s28  ;;  %p265_p9 = scmp.lt.u32.totalorder %s261_s28, %s385_s1 }
  0x16   :  { %p267_p10 = pnand %p265_p9, %p262_p8 }
  0x18   :  { %270 = shalt.err (!%p267_p10)
}
  0x19   :  { %s271_s6 = scalar_lea.vmem %s338_s15, 1024  ;;  %p276_p12 = scmp.lt.s32.totalorder %s338_s15, %s338_s15 }
  0x1a   :  { %p272_p11 = scmp.ne.s32.totalorder %s338_s15, %s271_s6  ;;  %p277_p13 = scmp.lt.s32.totalorder %s271_s6, %s271_s6 }
  0x1c   :  { %p278_p0 = por %p277_p13, %p276_p12 }
  0x1e   :  { %p279_p1 = pnand %p278_p0, %p272_p11 }
  0x20   :  { %282 = shalt.err (!%p279_p1)
}
  0x21   :  { %s313_s0 = smov 64   ;;  %s314_s7 = smov 4  }
  0x22   :  { %32 = dma.hbm_to_vmem [thread:$0]  %s385_s1, 1024, %s338_s15, [#allocation6], %s313_s0, %s313_s0, %s314_s7  }
  0x23   :  { %305 = dma.done.wait [#allocation3], 128  }
  0x24   :  { %306 = vsyncadd [#allocation3], 4294967168 }
  0x25   :  { %307 = dma.done.wait [#allocation6], 1024  }
  0x26   :  { %308 = vsyncadd [#allocation6], 4294966272  ;;  %v315_v0 = vmov 0.0   ;;  %vm316_vm0 = vmmov 0   ;;  %v231_v1 = vld [vmem:[#allocation5] sm:$0xff]   ;;  %v232_v2 = vld [vmem:[#allocation5 + $0x8] sm:$0xff]  }
  0x27   :  { %204 = vmatprep.subr.bf16.mxu0 %v315_v0  ;;  %220 = vmatprep.mubr.msk.bf16.mxu0 %vm316_vm0, %v315_v0  ;;  %v233_v3 = vld [vmem:[#allocation5 + $0x10] sm:$0xff]   ;;  %v234_v4 = vld [vmem:[#allocation5 + $0x18] sm:$0xff]   ;;  %v235_v5 = vld [vmem:[#allocation5 + $0x20] sm:$0xff]   ;;  %s317_s11 = smov [#allocation7]  }
  0x28   :  { %205 = vmatpush3.bf16.msra.mxu0 %v231_v1  ;;  %v236_v6 = vld [vmem:[#allocation5 + $0x28] sm:$0xff]   ;;  %v237_v7 = vld [vmem:[#allocation5 + $0x30] sm:$0xff]   ;;  %v238_v8 = vld [vmem:[#allocation5 + $0x38] sm:$0xff]   ;;  %s174_s12 = sshll.u32 %s317_s11, 4  ;;  %s175_s12 = int_to_ptr.vmem [resolvable:$true] %s174_s12 }
  0x29   :  { %206 = vmatprep.subr.bf16.mxu0 %v315_v0  ;;  %v56_v9 = vld [vmem:[#allocation2] sm:$0xff]  ;;  %s283_s13 = scalar_lea.vmem %s175_s12, 128  ;;  %p288_p3 = scmp.lt.s32.totalorder %s175_s12, %s175_s12 }
  0x2a   :  { %v57_v10 = vpack.c.bf16 %v56_v9, %v56_v9  ;;  %v186_v11 = vld [vmem:[%s386_s2] ss:$0 sm:$0xff]  ;;  %p284_p2 = scmp.ne.s32.totalorder %s175_s12, %s283_s13  ;;  %p289_p4 = scmp.lt.s32.totalorder %s283_s13, %s283_s13 }
  0x2c   :  { %207 = vmatpush3.bf16.msra.mxu0 %v232_v2  ;;  %p290_p5 = por %p289_p4, %p288_p3 }
  0x2d   :  { %208 = vmatprep.subr.bf16.mxu0 %v315_v0 }
  0x2e   :  { %p291_p6 = pnand %p290_p5, %p284_p2 }
  0x30   :  { %209 = vmatpush3.bf16.msra.mxu0 %v233_v3 }
  0x31   :  { %210 = vmatprep.subr.bf16.mxu0 %v315_v0 }
  0x34   :  { %211 = vmatpush3.bf16.msra.mxu0 %v234_v4 }
  0x35   :  { %212 = vmatprep.subr.bf16.mxu0 %v315_v0 }
  0x38   :  { %213 = vmatpush3.bf16.msra.mxu0 %v235_v5 }
  0x39   :  { %214 = vmatprep.subr.bf16.mxu0 %v315_v0 }
  0x3c   :  { %215 = vmatpush3.bf16.msra.mxu0 %v236_v6 }
  0x3d   :  { %216 = vmatprep.subr.bf16.mxu0 %v315_v0 }
  0x40   :  { %217 = vmatpush3.bf16.msra.mxu0 %v237_v7 }
  0x41   :  { %218 = vmatprep.subr.bf16.mxu0 %v315_v0 }
  0x44   :  { %219 = vmatpush3.bf16.msra.mxu0 %v238_v8 }
  0x47   :  { %221 = vmatmul.mubr.bf16.vlgmr.msra.gmra.mrb[0].mxu0 %v57_v10 }
 0x11a   :  { %v160_v12 = vpop.f32.mrb[0].mxu0 }
 0x11b   :  { %v166_v13 = vadd.f32 %v186_v11, %v160_v12  ;;  %v222_v14 = vpop.f32.mrb[1].mxu0 }
 0x11c   :  { %v163_v15 = vpop.f32.mrb[2].mxu0 }
 0x11d   :  { %167 = vst [vmem:[#allocation7] sm:$0xff] %v166_v13  ;;  %v223_v16 = vpop.f32.mrb[3].mxu0 }
 0x11e   :  { %294 = shalt.err (!%p291_p6)
}
 0x11f   :  { %s295_s2 = scalar_lea.hbm %s387_s3, 128 }
 0x120   :  { %p296_p7 = scmp.ne.s32.totalorder %s387_s3, %s295_s2  ;;  %p299_p8 = scmp.lt.u32.totalorder %s295_s2, %s387_s3 }
 0x122   :  { %p301_p9 = pnand %p299_p8, %p296_p7 }
 0x124   :  { %304 = shalt.err (!%p301_p9)
}
 0x125   :  { %177 = dma.vmem_to_hbm [thread:$0]  %s175_s12, 128, %s387_s3, [#allocation4]  }
 0x126   :  { %309 = dma.done.wait [#allocation4], 128  }
 0x127   :  { %310 = vsyncadd [#allocation4], 4294967168 }
 0x128   :  { %181 = vsyncpa [#allocation3], 1 }
 0x129   :  { %182 = vsyncpa [#allocation6], 1 }
 0x12a   :  { %183 = vsyncpa [#allocation4], 1 }

</bundles_post_ra>
